<compile_context>
chip_gen: v7x
topology: tpu7x:2x2x1
jax: 0.10.0
libtpu: 0.0.40
codegen_flags: <defaults>
</compile_context>

<pallas_src>
import functools

import jax
import jax.numpy as jnp
from jax.experimental import pallas as pl
from jax.experimental.pallas import tpu as pltpu

LANE = 128
SUBLANE = 8


def _round_up(v, m):
    return (v + m - 1) // m * m


# ----------------------------------------------------------------------------
# Fused kernel: whole MLPCatPredictor forward for one row-tile of the batch.
# ----------------------------------------------------------------------------
def _mlp_cat_kernel(*refs, n_hidden, hp, op):
    if n_hidden > 0:
        xi_ref, xj_ref, w1_ref, wh_ref, wl_ref, b_ref, out_ref = refs
    else:
        xi_ref, xj_ref, w1_ref, wl_ref, b_ref, out_ref = refs
        wh_ref = None

    tm = xi_ref.shape[0]
    xi = xi_ref[...]                       # f32 [tm, cin]
    xj = xj_ref[...]

    # Stack the two branches along M; concat is never built along features.
    #   x_top = [x_i ; x_j],  x_bot = [x_j ; x_i]
    #   layer1([cat(a,b)]) = a @ W_top + b @ W_bot + b1
    x_top = jnp.concatenate([xi, xj], axis=0).astype(jnp.bfloat16)   # [2tm, cin]
    x_bot = jnp.concatenate([xj, xi], axis=0).astype(jnp.bfloat16)

    biases = b_ref[...]                    # f32 [num_layers, P]

    h = (jnp.dot(x_top, w1_ref[0], preferred_element_type=jnp.float32)
         + jnp.dot(x_bot, w1_ref[1], preferred_element_type=jnp.float32)
         + biases[0:1, :hp])
    # eval mode: dropout is identity. ReLU after bf16 downcast (sign-preserving).
    h = jnp.maximum(h.astype(jnp.bfloat16), 0)                       # [2tm, hp]

    for l in range(n_hidden):
        h = (jnp.dot(h, wh_ref[l], preferred_element_type=jnp.float32)
             + biases[l + 1:l + 2, :hp])
        h = jnp.maximum(h.astype(jnp.bfloat16), 0)

    # Shared affine last layer; 0.5 already folded into W_last:
    #   (lin(h1) + lin(h2)) / 2 == (h1 + h2) @ (W/2) + b
    h_sum = h[:tm] + h[tm:]                                          # bf16 [tm, hp]
    out = (jnp.dot(h_sum, wl_ref[...], preferred_element_type=jnp.float32)
           + biases[n_hidden + 1:n_hidden + 2, :op])
    out_ref[...] = out.astype(out_ref.dtype)


# ----------------------------------------------------------------------------
# One-time parameter preparation: pad output dims to 128 lanes, cast to bf16,
# split layer-1 rows (no zero-K padding), fold 0.5 into W_last, pack into
# 4 arrays (w1 stack, hidden-W stack, W_last, bias stack).
# ----------------------------------------------------------------------------
def prepare_params(params_f32, in_channels):
    num_layers = len(params_f32)
    # TODO(synk): num_layers == 1 degenerate case (single shared Linear, no ReLU)
    # is not wired through the fused kernel; the model is normally used with >= 2.
    assert num_layers >= 2

    hidden = params_f32[0][0].shape[1]
    out_ch = params_f32[-1][0].shape[1]
    hp = _round_up(hidden, LANE)
    op = _round_up(out_ch, LANE)
    P = max(hp, op)

    def pad_w(w, r, c):
        return (jnp.zeros((r, c), jnp.float32)
                .at[:w.shape[0], :w.shape[1]].set(w).astype(jnp.bfloat16))

    def pad_b(b):
        return jnp.zeros((P,), jnp.float32).at[:b.shape[0]].set(b)

    w1, b1 = params_f32[0]                              # [2*cin, H]
    w1_stack = jnp.stack([pad_w(w1[:in_channels], in_channels, hp),   # W_top
                          pad_w(w1[in_channels:], in_channels, hp)])  # W_bot
    biases = [pad_b(b1)]

    wh_list = []
    for w, b in params_f32[1:-1]:
        wh_list.append(pad_w(w, hp, hp))
        biases.append(pad_b(b))

    wl, bl = params_f32[-1]
    wl_half = pad_w(0.5 * wl, hp, op)                   # fold averaging into W
    biases.append(pad_b(bl))                            # bias NOT scaled

    flat = [w1_stack]
    if wh_list:
        flat.append(jnp.stack(wh_list))                 # (n_hidden, hp, hp)
    flat += [wl_half, jnp.stack(biases)]                # (hp, op), (num_layers, P)

    meta = dict(num_layers=num_layers, n_hidden=len(wh_list),
                in_channels=in_channels, out_channels=out_ch,
                hp=hp, op=op)
    return flat, meta


# ----------------------------------------------------------------------------
# Forward wrapper
# ----------------------------------------------------------------------------
def mlp_cat_forward(flat_params, meta, x_i, x_j):
    n_hidden, hp, op = meta["n_hidden"], meta["hp"], meta["op"]
    B, cin = x_i.shape
    assert cin == meta["in_channels"] and x_j.shape == x_i.shape

    # Per-generation grid: v7x has 2 TensorCores -> 2 balanced parallel tiles;
    # v5e/v6e have 1 TC -> a single grid step (no per-step pipeline overhead).
    try:
        multi_tc = "v7" in jax.devices()[0].device_kind.lower()
    except Exception:
        multi_tc = False
    if multi_tc and B % (2 * SUBLANE) == 0:
        grid_n, tm = 2, B // 2
    else:
        grid_n, tm = 1, B

    row_spec = pl.BlockSpec((tm, cin), lambda i: (i, 0))

    def resident(shape):
        nd = len(shape)
        return pl.BlockSpec(shape, lambda i, _nd=nd: (0,) * _nd)

    in_specs = [row_spec, row_spec] + [resident(p.shape) for p in flat_params]

    out = pl.pallas_call(
        functools.partial(_mlp_cat_kernel, n_hidden=n_hidden, hp=hp, op=op),
        out_shape=jax.ShapeDtypeStruct((B, op), jnp.float32),
        grid=(grid_n,),
        in_specs=in_specs,
        out_specs=pl.BlockSpec((tm, op), lambda i: (i, 0)),
        compiler_params=pltpu.CompilerParams(
            dimension_semantics=("parallel",)),
    )(x_i, x_j, *flat_params)

    return out[:, :meta["out_channels"]]


# ----------------------------------------------------------------------------
# Test
# ----------------------------------------------------------------------------
if __name__ == "__main__":
    B = 256
    in_channels, hidden, out_channels, num_layers = 16, 64, 8, 3
    # dropout is only active in training; forward here matches eval mode.

    key = jax.random.PRNGKey(0)
    ki, kj, kp = jax.random.split(key, 3)
    x_i = jax.random.normal(ki, (B, in_channels), jnp.float32)
    x_j = jax.random.normal(kj, (B, in_channels), jnp.float32)

    # Linear params stored as [fan_in, fan_out] (transposed torch layout).
    dims = [2 * in_channels] + [hidden] * (num_layers - 1) + [out_channels]
    keys = jax.random.split(kp, 2 * num_layers)
    params = []
    for i in range(num_layers):
        w = 0.1 * jax.random.normal(keys[2 * i], (dims[i], dims[i + 1]),
                                    jnp.float32)
        b = 0.1 * jax.random.normal(keys[2 * i + 1], (dims[i + 1],), jnp.float32)
        params.append((w, b))

    flat, meta = prepare_params(params, in_channels)
    out = jax.block_until_ready(mlp_cat_forward(flat, meta, x_i, x_j))

    # Pure-JAX f32 reference (eval mode).
    x1 = jnp.concatenate([x_i, x_j], axis=-1)
    x2 = jnp.concatenate([x_j, x_i], axis=-1)
    for w, b in params[:-1]:
        x1 = jax.nn.relu(x1 @ w + b)
        x2 = jax.nn.relu(x2 @ w + b)
    wl, bl = params[-1]
    ref = ((x1 @ wl + bl) + (x2 @ wl + bl)) * 0.5

    assert out.shape == (B, out_channels)
    assert jnp.all(jnp.isfinite(out))
    max_err = float(jnp.max(jnp.abs(out - ref)))
    assert max_err < 5e-2, f"max abs err {max_err}"
    print("KERNEL_OK")
</pallas_src>

<mosaic_0001>
module attributes {stable_mosaic.version = 11 : i64} {
  func.func @_mlp_cat_kernel(%arg0: i32, %arg1: memref<256x16xf32, #tpu.memory_space<vmem>>, %arg2: memref<256x16xf32, #tpu.memory_space<vmem>>, %arg3: memref<2x16x128xbf16, #tpu.memory_space<vmem>>, %arg4: memref<1x128x128xbf16, #tpu.memory_space<vmem>>, %arg5: memref<128x128xbf16, #tpu.memory_space<vmem>>, %arg6: memref<3x128xf32, #tpu.memory_space<vmem>>, %arg7: memref<256x128xf32, #tpu.memory_space<vmem>>) attributes {dimension_semantics = [#tpu.dimension_semantics<parallel>], iteration_bounds = array<i64: 1>, scalar_prefetch = 0 : i64, scratch_operands = 0 : i64, tpu.core_type = #tpu.core_type<tc>, window_params = [{transform_indices = @transform_0, window_bounds = array<i64: 256, 16>}, {transform_indices = @transform_1, window_bounds = array<i64: 256, 16>}, {pipeline_mode = #tpu.pipeline_mode<synchronous>, transform_indices = @transform_2, window_bounds = array<i64: 2, 16, 128>}, {pipeline_mode = #tpu.pipeline_mode<synchronous>, transform_indices = @transform_3, window_bounds = array<i64: 1, 128, 128>}, {pipeline_mode = #tpu.pipeline_mode<synchronous>, transform_indices = @transform_4, window_bounds = array<i64: 128, 128>}, {pipeline_mode = #tpu.pipeline_mode<synchronous>, transform_indices = @transform_5, window_bounds = array<i64: 3, 128>}, {transform_indices = @transform_6, window_bounds = array<i64: 256, 128>}]} {
    %c0 = arith.constant 0 : index
    %c0_0 = arith.constant 0 : index
    %0 = vector.load %arg1[%c0, %c0_0] : memref<256x16xf32, #tpu.memory_space<vmem>>, vector<256x16xf32>
    %c0_1 = arith.constant 0 : index
    %c0_2 = arith.constant 0 : index
    %1 = vector.load %arg2[%c0_1, %c0_2] : memref<256x16xf32, #tpu.memory_space<vmem>>, vector<256x16xf32>
    %2 = tpu.concatenate %0, %1 in 0 : vector<256x16xf32>, vector<256x16xf32> -> vector<512x16xf32>
    %3 = arith.truncf %2 : vector<512x16xf32> to vector<512x16xbf16>
    %4 = tpu.concatenate %1, %0 in 0 : vector<256x16xf32>, vector<256x16xf32> -> vector<512x16xf32>
    %5 = arith.truncf %4 : vector<512x16xf32> to vector<512x16xbf16>
    %c0_3 = arith.constant 0 : index
    %c0_4 = arith.constant 0 : index
    %6 = vector.load %arg6[%c0_3, %c0_4] : memref<3x128xf32, #tpu.memory_space<vmem>>, vector<3x128xf32>
    %c0_5 = arith.constant 0 : index
    %c0_6 = arith.constant 0 : index
    %c0_7 = arith.constant 0 : index
    %7 = vector.load %arg3[%c0_5, %c0_6, %c0_7] : memref<2x16x128xbf16, #tpu.memory_space<vmem>>, vector<1x16x128xbf16>
    %8 = vector.shape_cast %7 : vector<1x16x128xbf16> to vector<16x128xbf16>
    %cst = arith.constant dense<0.000000e+00> : vector<512x128xf32>
    %9 = tpu.matmul %3, %8, %cst {dimension_numbers = #tpu.dot_dimension_numbers<[1], [0], [0], [1], [0, 0, 1, 1], [], []>} : vector<512x16xbf16>, vector<16x128xbf16>, vector<512x128xf32> -> vector<512x128xf32>
    %c1 = arith.constant 1 : index
    %c0_8 = arith.constant 0 : index
    %c0_9 = arith.constant 0 : index
    %10 = vector.load %arg3[%c1, %c0_8, %c0_9] : memref<2x16x128xbf16, #tpu.memory_space<vmem>>, vector<1x16x128xbf16>
    %11 = vector.shape_cast %10 : vector<1x16x128xbf16> to vector<16x128xbf16>
    %cst_10 = arith.constant dense<0.000000e+00> : vector<512x128xf32>
    %12 = tpu.matmul %5, %11, %cst_10 {dimension_numbers = #tpu.dot_dimension_numbers<[1], [0], [0], [1], [0, 0, 1, 1], [], []>} : vector<512x16xbf16>, vector<16x128xbf16>, vector<512x128xf32> -> vector<512x128xf32>
    %13 = arith.addf %9, %12 : vector<512x128xf32>
    %14 = vector.extract_strided_slice %6 {offsets = [0, 0], sizes = [1, 128], strides = [1, 1]} : vector<3x128xf32> to vector<1x128xf32>
    %15 = vector.broadcast %14 : vector<1x128xf32> to vector<512x128xf32>
    %16 = arith.addf %13, %15 : vector<512x128xf32>
    %17 = arith.truncf %16 : vector<512x128xf32> to vector<512x128xbf16>
    %cst_11 = arith.constant 0.000000e+00 : bf16
    %18 = vector.broadcast %cst_11 : bf16 to vector<512x128xbf16>
    %19 = arith.maximumf %17, %18 : vector<512x128xbf16>
    %c0_12 = arith.constant 0 : index
    %c0_13 = arith.constant 0 : index
    %c0_14 = arith.constant 0 : index
    %20 = vector.load %arg4[%c0_12, %c0_13, %c0_14] : memref<1x128x128xbf16, #tpu.memory_space<vmem>>, vector<1x128x128xbf16>
    %21 = vector.shape_cast %20 : vector<1x128x128xbf16> to vector<128x128xbf16>
    %cst_15 = arith.constant dense<0.000000e+00> : vector<512x128xf32>
    %22 = tpu.matmul %19, %21, %cst_15 {dimension_numbers = #tpu.dot_dimension_numbers<[1], [0], [0], [1], [0, 0, 1, 1], [], []>} : vector<512x128xbf16>, vector<128x128xbf16>, vector<512x128xf32> -> vector<512x128xf32>
    %23 = vector.extract_strided_slice %6 {offsets = [1, 0], sizes = [1, 128], strides = [1, 1]} : vector<3x128xf32> to vector<1x128xf32>
    %24 = vector.broadcast %23 : vector<1x128xf32> to vector<512x128xf32>
    %25 = arith.addf %22, %24 : vector<512x128xf32>
    %26 = arith.truncf %25 : vector<512x128xf32> to vector<512x128xbf16>
    %cst_16 = arith.constant 0.000000e+00 : bf16
    %27 = vector.broadcast %cst_16 : bf16 to vector<512x128xbf16>
    %28 = arith.maximumf %26, %27 : vector<512x128xbf16>
    %29 = vector.extract_strided_slice %28 {offsets = [0, 0], sizes = [256, 128], strides = [1, 1]} : vector<512x128xbf16> to vector<256x128xbf16>
    %30 = vector.extract_strided_slice %28 {offsets = [256, 0], sizes = [256, 128], strides = [1, 1]} : vector<512x128xbf16> to vector<256x128xbf16>
    %31 = arith.addf %29, %30 : vector<256x128xbf16>
    %c0_17 = arith.constant 0 : index
    %c0_18 = arith.constant 0 : index
    %32 = vector.load %arg5[%c0_17, %c0_18] : memref<128x128xbf16, #tpu.memory_space<vmem>>, vector<128x128xbf16>
    %cst_19 = arith.constant dense<0.000000e+00> : vector<256x128xf32>
    %33 = tpu.matmul %31, %32, %cst_19 {dimension_numbers = #tpu.dot_dimension_numbers<[1], [0], [0], [1], [0, 0, 1, 1], [], []>} : vector<256x128xbf16>, vector<128x128xbf16>, vector<256x128xf32> -> vector<256x128xf32>
    %34 = vector.extract_strided_slice %6 {offsets = [2, 0], sizes = [1, 128], strides = [1, 1]} : vector<3x128xf32> to vector<1x128xf32>
    %35 = vector.broadcast %34 : vector<1x128xf32> to vector<256x128xf32>
    %36 = arith.addf %33, %35 : vector<256x128xf32>
    %c0_20 = arith.constant 0 : index
    %c0_21 = arith.constant 0 : index
    %37 = vector.load %arg7[%c0_20, %c0_21] : memref<256x128xf32, #tpu.memory_space<vmem>>, vector<256x128xf32>
    tpu.vector_store %arg7[%c0_20, %c0_21], %36 {strides = array<i32>} : memref<256x128xf32, #tpu.memory_space<vmem>>, vector<256x128xf32>,
    return
  }
  func.func @transform_0(%arg0: i32) -> (i32, i32) {
    %c0_i32 = arith.constant 0 : i32
    %c0_i32_0 = arith.constant 0 : i32
    return %arg0, %c0_i32 : i32, i32
  }
  func.func @transform_1(%arg0: i32) -> (i32, i32) {
    %c0_i32 = arith.constant 0 : i32
    %c0_i32_0 = arith.constant 0 : i32
    return %arg0, %c0_i32 : i32, i32
  }
  func.func @transform_2(%arg0: i32) -> (i32, i32, i32) {
    %c0_i32 = arith.constant 0 : i32
    %c0_i32_0 = arith.constant 0 : i32
    %c0_i32_1 = arith.constant 0 : i32
    %c0_i32_2 = arith.constant 0 : i32
    return %c0_i32, %c0_i32_0, %c0_i32_1 : i32, i32, i32
  }
  func.func @transform_3(%arg0: i32) -> (i32, i32, i32) {
    %c0_i32 = arith.constant 0 : i32
    %c0_i32_0 = arith.constant 0 : i32
    %c0_i32_1 = arith.constant 0 : i32
    %c0_i32_2 = arith.constant 0 : i32
    return %c0_i32, %c0_i32_0, %c0_i32_1 : i32, i32, i32
  }
  func.func @transform_4(%arg0: i32) -> (i32, i32) {
    %c0_i32 = arith.constant 0 : i32
    %c0_i32_0 = arith.constant 0 : i32
    %c0_i32_1 = arith.constant 0 : i32
    return %c0_i32, %c0_i32_0 : i32, i32
  }
  func.func @transform_5(%arg0: i32) -> (i32, i32) {
    %c0_i32 = arith.constant 0 : i32
    %c0_i32_0 = arith.constant 0 : i32
    %c0_i32_1 = arith.constant 0 : i32
    return %c0_i32, %c0_i32_0 : i32, i32
  }
  func.func @transform_6(%arg0: i32) -> (i32, i32) {
    %c0_i32 = arith.constant 0 : i32
    %c0_i32_0 = arith.constant 0 : i32
    return %arg0, %c0_i32 : i32, i32
  }
}

</mosaic_0001>

<bundles_post_ra>
// kernel: tpu_custom_call.1
= control target key start
LH: loop header
LB: loop body
LE: loop exit
PB: predicated region body
PF: predicated region fallthrough
CT: control target
= control target key end

     0   :  { %vm133_vm0 = vcmask 130048   ;;  %s3138_s0 = inlined_call_operand.vmem [shape: f32[256,16], index: 0, kind: input, shape index: {}]   ;;  %s3139_s1 = inlined_call_operand.vmem [shape: f32[256,16], index: 1, kind: input, shape index: {}]   ;;  %s3140_s2 = inlined_call_operand.vmem [shape: bf16[2,16,128], index: 2, kind: input, shape index: {}]   ;;  %s3141_s3 = inlined_call_operand.vmem [shape: bf16[1,128,128], index: 3, kind: input, shape index: {}]   ;;  %s3142_s4 = inlined_call_operand.vmem [shape: bf16[128,128], index: 4, kind: input, shape index: {}]   ;;  %s3143_s5 = inlined_call_operand.vmem [shape: f32[3,128], index: 5, kind: input, shape index: {}]   ;;  %s3144_s6 = inlined_call_operand.hbm [shape: f32[256,128], index: 6, kind: output, shape index: {}]  }
   0x1   :  { %v2204_v0 = vld [vmem:[%s3140_s2 + $0x8] sm:$0xff]   ;;  %v57_v1 = vld [vmem:[%s3139_s1] sm:$0xff]  ;;  %v59_v3 = vld [vmem:[%s3139_s1 + $0x10] sm:$0xff] }
   0x2   :  { %v58_v2 = vld [vmem:[%s3139_s1 + $0x8] sm:$0xff]  ;;  %1874 = vmatprep.subr.bf16.mxu0 %v2204_v0  ;;  %v60_v5 = vld [vmem:[%s3139_s1 + $0x18] sm:$0xff]  ;;  %2134 = vmatprep.subr.bf16.mxu1 %v2204_v0  ;;  %v2205_v7 = vld [vmem:[%s3140_s2] sm:$0xff]  }
   0x3   :  { %v2297_v4 = vpack.c.bf16 %v58_v2, %v57_v1  ;;  %1875 = vmatpush3.bf16.msra.mxu0 %v2204_v0  ;;  %v2302_v6 = vpack.c.bf16 %v60_v5, %v59_v3  ;;  %v61_v8 = vld [vmem:[%s3139_s1 + $0x20] sm:$0xff]  ;;  %v62_v9 = vld [vmem:[%s3139_s1 + $0x28] sm:$0xff]  ;;  %2135 = vmatpush3.bf16.msra.mxu1 %v2204_v0  ;;  %v63_v11 = vld [vmem:[%s3139_s1 + $0x30] sm:$0xff] }
   0x4   :  { %v2315_v10 = vpack.c.bf16 %v62_v9, %v61_v8  ;;  %1940 = vmatprep.subr.bf16.mxu0 %v2205_v7  ;;  %v64_v12 = vld [vmem:[%s3139_s1 + $0x38] sm:$0xff]  ;;  %v65_v13 = vld [vmem:[%s3139_s1 + $0x40] sm:$0xff]  ;;  %v66_v14 = vld [vmem:[%s3139_s1 + $0x48] sm:$0xff] }
   0x5   :  { %1876 = vmatprep.mubr.msk.bf16.mxu0 %vm133_vm0, %v2297_v4  ;;  %v2333_v15 = vpack.c.bf16 %v64_v12, %v63_v11  ;;  %v2335_v16 = vpack.c.bf16 %v66_v14, %v65_v13  ;;  %v67_v17 = vld [vmem:[%s3139_s1 + $0x50] sm:$0xff]  ;;  %v68_v18 = vld [vmem:[%s3139_s1 + $0x58] sm:$0xff]  ;;  %v69_v19 = vld [vmem:[%s3139_s1 + $0x60] sm:$0xff] }
   0x6   :  { %1877 = vmatmul.mubr.msk.bf16.vlgmr.msra.gmra.mrb[0].mxu0 %vm133_vm0, %v2302_v6  ;;  %v70_v20 = vld [vmem:[%s3139_s1 + $0x68] sm:$0xff]  ;;  %v2353_v21 = vpack.c.bf16 %v68_v18, %v67_v17  ;;  %v41_v22 = vld [vmem:[%s3138_s0 + $0x80] sm:$0xff]  ;;  %v43_v24 = vld [vmem:[%s3138_s0 + $0x90] sm:$0xff] }
   0x7   :  { %1941 = vmatpush3.bf16.msra.mxu0 %v2205_v7  ;;  %1880 = vmatprep.mubr.msk.bf16.mxu0 %vm133_vm0, %v2315_v10  ;;  %v42_v23 = vld [vmem:[%s3138_s0 + $0x88] sm:$0xff]  ;;  %v2364_v25 = vpack.c.bf16 %v70_v20, %v69_v19  ;;  %v44_v27 = vld [vmem:[%s3138_s0 + $0x98] sm:$0xff]  ;;  %v45_v28 = vld [vmem:[%s3138_s0 + $0xa0] sm:$0xff] }
   0x8   :  { %v2366_v26 = vpack.c.bf16 %v42_v23, %v41_v22  ;;  %v46_v29 = vld [vmem:[%s3138_s0 + $0xa8] sm:$0xff]  ;;  %v2377_v30 = vpack.c.bf16 %v44_v27, %v43_v24  ;;  %v71_v31 = vld [vmem:[%s3139_s1 + $0x70] sm:$0xff]  ;;  %v72_v32 = vld [vmem:[%s3139_s1 + $0x78] sm:$0xff] }
   0x9   :  { %v2385_v33 = vpack.c.bf16 %v46_v29, %v45_v28  ;;  %v73_v34 = vld [vmem:[%s3139_s1 + $0x80] sm:$0xff]  ;;  %v74_v35 = vld [vmem:[%s3139_s1 + $0x88] sm:$0xff]  ;;  %v47_v36 = vld [vmem:[%s3138_s0 + $0xb0] sm:$0xff]  ;;  %v2415_v40 = vpack.c.bf16 %v72_v32, %v71_v31 }
   0xa   :  { %1924 = vmatprep.mubr.msk.bf16.mxu1 %vm133_vm0, %v2366_v26  ;;  %v48_v37 = vld [vmem:[%s3138_s0 + $0xb8] sm:$0xff]  ;;  %v49_v38 = vld [vmem:[%s3138_s0 + $0xc0] sm:$0xff]  ;;  %v50_v39 = vld [vmem:[%s3138_s0 + $0xc8] sm:$0xff]  ;;  %v2417_v41 = vpack.c.bf16 %v74_v35, %v73_v34 }
   0xb   :  { %1925 = vmatmul.mubr.msk.bf16.vlgmr.msra.gmra.mrb[0].mxu1 %vm133_vm0, %v2377_v30  ;;  %v2419_v42 = vpack.c.bf16 %v48_v37, %v47_v36  ;;  %v75_v43 = vld [vmem:[%s3139_s1 + $0x90] sm:$0xff]  ;;  %v76_v44 = vld [vmem:[%s3139_s1 + $0x98] sm:$0xff]  ;;  %v2427_v45 = vpack.c.bf16 %v50_v39, %v49_v38  ;;  %v77_v46 = vld [vmem:[%s3139_s1 + $0xa0] sm:$0xff] }
   0xc   :  { %1928 = vmatprep.mubr.msk.bf16.mxu1 %vm133_vm0, %v2385_v33  ;;  %v78_v47 = vld [vmem:[%s3139_s1 + $0xa8] sm:$0xff]  ;;  %v51_v48 = vld [vmem:[%s3138_s0 + $0xd0] sm:$0xff]  ;;  %v52_v49 = vld [vmem:[%s3138_s0 + $0xd8] sm:$0xff]  ;;  %v2449_v50 = vpack.c.bf16 %v76_v44, %v75_v43 }
   0xd   :  { %v53_v51 = vld [vmem:[%s3138_s0 + $0xe0] sm:$0xff]  ;;  %v54_v52 = vld [vmem:[%s3138_s0 + $0xe8] sm:$0xff] }
   0xe   :  { %1881 = vmatmul.mubr.msk.bf16.gmra.mrb[4].mxu0 %vm133_vm0, %v2333_v15 }
   0xf   :  { %1884 = vmatprep.mubr.msk.bf16.mxu0 %vm133_vm0, %v2335_v16 }
  0x13   :  { %1929 = vmatmul.mubr.msk.bf16.gmra.mrb[4].mxu1 %vm133_vm0, %v2419_v42 }
  0x14   :  { %1932 = vmatprep.mubr.msk.bf16.mxu1 %vm133_vm0, %v2427_v45 }
  0x16   :  { %1885 = vmatmul.mubr.msk.bf16.gmra.mrb[8].mxu0 %vm133_vm0, %v2353_v21 }
  0x17   :  { %1888 = vmatprep.mubr.msk.bf16.mxu0 %vm133_vm0, %v2364_v25 }
  0x1e   :  { %1889 = vmatmul.mubr.msk.bf16.gmra.mrb[12].mxu0 %vm133_vm0, %v2415_v40 }
  0x1f   :  { %1892 = vmatprep.mubr.msk.bf16.mxu0 %vm133_vm0, %v2417_v41 }
  0x20   :  { %11 = vsyncpa [#allocation3], 0  ;;  %v2457_v53 = vpack.c.bf16 %v78_v47, %v77_v46  ;;  %v2459_v54 = vpack.c.bf16 %v52_v49, %v51_v48  ;;  %v2461_v55 = vpack.c.bf16 %v54_v52, %v53_v51  ;;  %v79_v56 = vld [vmem:[%s3139_s1 + $0xb0] sm:$0xff]  ;;  %v80_v57 = vld [vmem:[%s3139_s1 + $0xb8] sm:$0xff] }
  0x21   :  { %v81_v58 = vld [vmem:[%s3139_s1 + $0xc0] sm:$0xff]  ;;  %v82_v59 = vld [vmem:[%s3139_s1 + $0xc8] sm:$0xff]  ;;  %v55_v60 = vld [vmem:[%s3138_s0 + $0xf0] sm:$0xff]  ;;  %v2489_v62 = vpack.c.bf16 %v80_v57, %v79_v56 }
  0x22   :  { %1933 = vmatmul.mubr.msk.bf16.gmra.mrb[8].mxu1 %vm133_vm0, %v2459_v54  ;;  %v56_v61 = vld [vmem:[%s3138_s0 + $0xf8] sm:$0xff]  ;;  %v2491_v63 = vpack.c.bf16 %v82_v59, %v81_v58  ;;  %v83_v1 = vld [vmem:[%s3139_s1 + $0xd0] sm:$0xff]  ;;  %v85_v3 = vld [vmem:[%s3139_s1 + $0xe0] sm:$0xff] }
  0x23   :  { %1936 = vmatprep.mubr.msk.bf16.mxu1 %vm133_vm0, %v2461_v55  ;;  %v2493_v0 = vpack.c.bf16 %v56_v61, %v55_v60  ;;  %v84_v2 = vld [vmem:[%s3139_s1 + $0xd8] sm:$0xff]  ;;  %v86_v5 = vld [vmem:[%s3139_s1 + $0xe8] sm:$0xff]  ;;  %v87_v9 = vld [vmem:[%s3139_s1 + $0xf0] sm:$0xff] }
  0x24   :  { %v2513_v7 = vpack.c.bf16 %v84_v2, %v83_v1  ;;  %v2515_v8 = vpack.c.bf16 %v86_v5, %v85_v3  ;;  %v88_v11 = vld [vmem:[%s3139_s1 + $0xf8] sm:$0xff]  ;;  %v25_v12 = vld [vmem:[%s3138_s0] sm:$0xff]  ;;  %v26_v13 = vld [vmem:[%s3138_s0 + $0x8] sm:$0xff] }
  0x25   :  { %v2533_v14 = vpack.c.bf16 %v88_v11, %v87_v9  ;;  %v89_v17 = vpack.c.bf16 %v26_v13, %v25_v12  ;;  %v27_v18 = vld [vmem:[%s3138_s0 + $0x10] sm:$0xff]  ;;  %v28_v19 = vld [vmem:[%s3138_s0 + $0x18] sm:$0xff]  ;;  %v29_v20 = vld [vmem:[%s3138_s0 + $0x20] sm:$0xff] }
  0x26   :  { %1893 = vmatmul.mubr.msk.bf16.gmra.mrb[16].mxu0 %vm133_vm0, %v2449_v50  ;;  %v30_v22 = vld [vmem:[%s3138_s0 + $0x28] sm:$0xff]  ;;  %v90_v23 = vpack.c.bf16 %v28_v19, %v27_v18  ;;  %v31_v27 = vld [vmem:[%s3138_s0 + $0x30] sm:$0xff]  ;;  %v32_v28 = vld [vmem:[%s3138_s0 + $0x38] sm:$0xff] }
  0x27   :  { %1896 = vmatprep.mubr.msk.bf16.mxu0 %vm133_vm0, %v2457_v53  ;;  %v91_v24 = vpack.c.bf16 %v30_v22, %v29_v20  ;;  %v33_v29 = vld [vmem:[%s3138_s0 + $0x40] sm:$0xff]  ;;  %v34_v31 = vld [vmem:[%s3138_s0 + $0x48] sm:$0xff]  ;;  %v92_v32 = vpack.c.bf16 %v32_v28, %v31_v27  ;;  %v35_v35 = vld [vmem:[%s3138_s0 + $0x50] sm:$0xff] }
  0x28   :  { %v93_v34 = vpack.c.bf16 %v34_v31, %v33_v29  ;;  %v36_v36 = vld [vmem:[%s3138_s0 + $0x58] sm:$0xff]  ;;  %v37_v37 = vld [vmem:[%s3138_s0 + $0x60] sm:$0xff]  ;;  %v38_v38 = vld [vmem:[%s3138_s0 + $0x68] sm:$0xff] }
  0x29   :  { %v94_v39 = vpack.c.bf16 %v36_v36, %v35_v35  ;;  %v95_v43 = vpack.c.bf16 %v38_v38, %v37_v37  ;;  %v39_v44 = vld [vmem:[%s3138_s0 + $0x70] sm:$0xff]  ;;  %v40_v46 = vld [vmem:[%s3138_s0 + $0x78] sm:$0xff]  ;;  %v2206_v48 = vld [vmem:[%s3141_s3] sm:$0xff]  }
  0x2a   :  { %1937 = vmatmul.mubr.msk.bf16.gmra.mrb[12].mxu1 %vm133_vm0, %v2493_v0  ;;  %v96_v47 = vpack.c.bf16 %v40_v46, %v39_v44  ;;  %v2207_v49 = vld [vmem:[%s3141_s3 + $0x8] sm:$0xff]   ;;  %2006 = vmatprep.subr.bf16.mxu1 %v2206_v48  ;;  %v2208_v51 = vld [vmem:[%s3141_s3 + $0x10] sm:$0xff]   ;;  %v2209_v52 = vld [vmem:[%s3141_s3 + $0x18] sm:$0xff]  }
  0x2b   :  { %2007 = vmatpush3.bf16.msra.mxu1 %v2206_v48  ;;  %v2210_v56 = vld [vmem:[%s3141_s3 + $0x20] sm:$0xff]   ;;  %v2211_v57 = vld [vmem:[%s3141_s3 + $0x28] sm:$0xff]  }
  0x2c   :  { %2008 = vmatprep.subr.bf16.mxu1 %v2207_v49  ;;  %v2705_v61 = vld [vmem:[%s3143_s5] sm:$0x7]  ;;  %v2215_v20 = vld [vmem:[%s3142_s4 + $0x8] sm:$0xff]  }
  0x2d   :  { %v2214_v11 = vld [vmem:[%s3142_s4] sm:$0xff]  }
  0x2e   :  { %1897 = vmatmul.mubr.msk.bf16.gmra.mrb[20].mxu0 %vm133_vm0, %v2489_v62 }
  0x2f   :  { %1900 = vmatprep.mubr.msk.bf16.mxu0 %vm133_vm0, %v2491_v63  ;;  %2009 = vmatpush3.bf16.msra.mxu1 %v2207_v49 }
  0x30   :  { %2010 = vmatprep.subr.bf16.mxu1 %v2208_v51 }
  0x33   :  { %2011 = vmatpush3.bf16.msra.mxu1 %v2208_v51 }
  0x34   :  { %2012 = vmatprep.subr.bf16.mxu1 %v2209_v52 }
  0x36   :  { %1901 = vmatmul.mubr.msk.bf16.gmra.mrb[24].mxu0 %vm133_vm0, %v2513_v7 }
  0x37   :  { %1904 = vmatprep.mubr.msk.bf16.mxu0 %vm133_vm0, %v2515_v8  ;;  %2013 = vmatpush3.bf16.msra.mxu1 %v2209_v52 }
  0x38   :  { %2014 = vmatprep.subr.bf16.mxu1 %v2210_v56 }
  0x3b   :  { %2015 = vmatpush3.bf16.msra.mxu1 %v2210_v56 }
  0x3c   :  { %2016 = vmatprep.subr.bf16.mxu1 %v2211_v57 }
  0x3e   :  { %1905 = vmatmul.mubr.msk.bf16.gmra.mrb[28].mxu0 %vm133_vm0, %v2533_v14 }
  0x3f   :  { %1908 = vmatprep.mubr.msk.bf16.mxu0 %vm133_vm0, %v89_v17  ;;  %2017 = vmatpush3.bf16.msra.mxu1 %v2211_v57 }
  0x46   :  { %1909 = vmatmul.mubr.msk.bf16.gmra.mrb[32].mxu0 %vm133_vm0, %v90_v23 }
  0x47   :  { %1912 = vmatprep.mubr.msk.bf16.mxu0 %vm133_vm0, %v91_v24 }
  0x4e   :  { %1913 = vmatmul.mubr.msk.bf16.gmra.mrb[36].mxu0 %vm133_vm0, %v92_v32 }
  0x4f   :  { %1916 = vmatprep.mubr.msk.bf16.mxu0 %vm133_vm0, %v93_v34 }
  0x56   :  { %1917 = vmatmul.mubr.msk.bf16.gmra.mrb[40].mxu0 %vm133_vm0, %v94_v39 }
  0x57   :  { %1920 = vmatprep.mubr.msk.bf16.mxu0 %vm133_vm0, %v95_v43 }
  0x5e   :  { %1921 = vmatmul.mubr.msk.bf16.gmra.mrb[44].mxu0 %vm133_vm0, %v96_v47 }
  0x5f   :  { %1942 = vmatprep.mubr.msk.bf16.mxu0 %vm133_vm0, %v89_v17 }
  0x66   :  { %1943 = vmatmul.mubr.msk.bf16.vlgmr.msra.gmra.mrb[0].mxu0 %vm133_vm0, %v90_v23 }
  0x67   :  { %1946 = vmatprep.mubr.msk.bf16.mxu0 %vm133_vm0, %v91_v24 }
  0x6e   :  { %1947 = vmatmul.mubr.msk.bf16.gmra.mrb[4].mxu0 %vm133_vm0, %v92_v32  ;;  %v2216_v32 = vld [vmem:[%s3142_s4 + $0x10] sm:$0xff]  }
  0x6f   :  { %1950 = vmatprep.mubr.msk.bf16.mxu0 %vm133_vm0, %v93_v34 }
  0x76   :  { %1951 = vmatmul.mubr.msk.bf16.gmra.mrb[8].mxu0 %vm133_vm0, %v94_v39  ;;  %v2217_v39 = vld [vmem:[%s3142_s4 + $0x18] sm:$0xff]  }
  0x77   :  { %1954 = vmatprep.mubr.msk.bf16.mxu0 %vm133_vm0, %v95_v43 }
  0x7e   :  { %1955 = vmatmul.mubr.msk.bf16.gmra.mrb[12].mxu0 %vm133_vm0, %v96_v47 }
  0x7f   :  { %1958 = vmatprep.mubr.msk.bf16.mxu0 %vm133_vm0, %v2366_v26 }
  0x86   :  { %1959 = vmatmul.mubr.msk.bf16.gmra.mrb[16].mxu0 %vm133_vm0, %v2377_v30 }
  0x87   :  { %1962 = vmatprep.mubr.msk.bf16.mxu0 %vm133_vm0, %v2385_v33 }
  0x8e   :  { %1963 = vmatmul.mubr.msk.bf16.gmra.mrb[20].mxu0 %vm133_vm0, %v2419_v42 }
  0x8f   :  { %1966 = vmatprep.mubr.msk.bf16.mxu0 %vm133_vm0, %v2427_v45 }
  0x96   :  { %1967 = vmatmul.mubr.msk.bf16.gmra.mrb[24].mxu0 %vm133_vm0, %v2459_v54 }
  0x97   :  { %1970 = vmatprep.mubr.msk.bf16.mxu0 %vm133_vm0, %v2461_v55 }
  0x9e   :  { %1971 = vmatmul.mubr.msk.bf16.gmra.mrb[28].mxu0 %vm133_vm0, %v2493_v0 }
  0x9f   :  { %1974 = vmatprep.mubr.msk.bf16.mxu0 %vm133_vm0, %v2297_v4  ;;  %v2212_v4 = vld [vmem:[%s3141_s3 + $0x30] sm:$0xff]  }
  0xa0   :  { %2018 = vmatprep.subr.bf16.mxu1 %v2212_v4 }
  0xa1   :  { %2019 = vmatpush3.bf16.msra.mxu1 %v2212_v4 }
  0xa6   :  { %1975 = vmatmul.mubr.msk.bf16.gmra.mrb[32].mxu0 %vm133_vm0, %v2302_v6  ;;  %v2213_v6 = vld [vmem:[%s3141_s3 + $0x38] sm:$0xff]  }
  0xa7   :  { %1978 = vmatprep.mubr.msk.bf16.mxu0 %vm133_vm0, %v2315_v10  ;;  %2020 = vmatprep.subr.bf16.mxu1 %v2213_v6 }
  0xa8   :  { %2021 = vmatpush3.bf16.msra.mxu1 %v2213_v6 }
  0xa9   :  { %2086 = vmatprep.subr.bf16.mxu1 %v2214_v11 }
  0xae   :  { %1979 = vmatmul.mubr.msk.bf16.gmra.mrb[36].mxu0 %vm133_vm0, %v2333_v15 }
  0xaf   :  { %1982 = vmatprep.mubr.msk.bf16.mxu0 %vm133_vm0, %v2335_v16 }
  0xb6   :  { %1983 = vmatmul.mubr.msk.bf16.gmra.mrb[40].mxu0 %vm133_vm0, %v2353_v21 }
  0xb7   :  { %1986 = vmatprep.mubr.msk.bf16.mxu0 %vm133_vm0, %v2364_v25 }
  0xbe   :  { %1987 = vmatmul.mubr.msk.bf16.gmra.mrb[44].mxu0 %vm133_vm0, %v2415_v40 }
  0xbf   :  { %1990 = vmatprep.mubr.msk.bf16.mxu0 %vm133_vm0, %v2417_v41 }
  0xc6   :  { %1991 = vmatmul.mubr.msk.bf16.gmra.mrb[48].mxu0 %vm133_vm0, %v2449_v50  ;;  %v814_v50 = vlaneseq }
  0xc7   :  { %1994 = vmatprep.mubr.msk.bf16.mxu0 %vm133_vm0, %v2457_v53 }
  0xc8   :  { %v2695_v55 = vshrl.u32 %v814_v50, 7 }
  0xca   :  { %v816_v60 = vsub.s32 0, %v2695_v55 }
  0xce   :  { %1995 = vmatmul.mubr.msk.bf16.gmra.mrb[52].mxu0 %vm133_vm0, %v2489_v62  ;;  %v2708_v62 = vrot.slane %v2705_v61, %v816_v60 }
  0xcf   :  { %1998 = vmatprep.mubr.msk.bf16.mxu0 %vm133_vm0, %v2491_v63 }
  0xd6   :  { %1999 = vmatmul.mubr.msk.bf16.gmra.mrb[56].mxu0 %vm133_vm0, %v2513_v7 }
  0xd7   :  { %2002 = vmatprep.mubr.msk.bf16.mxu0 %vm133_vm0, %v2515_v8 }
  0xde   :  { %2003 = vmatmul.mubr.msk.bf16.gmra.mrb[60].mxu0 %vm133_vm0, %v2533_v14  ;;  %v2667_v10 = vpop.f32.mrb[0].mxu1  ;;  %v2246_v14 = vmov 0  }
  0xdf   :  { %v2669_v15 = vpop.f32.mrb[1].mxu1 }
  0xe0   :  { %v2671_v16 = vpop.f32.mrb[2].mxu1 }
  0xe1   :  { %v2673_v21 = vpop.f32.mrb[3].mxu1 }
  0xe6   :  { %v2675_v25 = vpop.f32.mrb[4].mxu1 }
  0xe7   :  { %v2677_v26 = vpop.f32.mrb[5].mxu1 }
  0xe8   :  { %v2679_v30 = vpop.f32.mrb[6].mxu1 }
  0xe9   :  { %v2681_v33 = vpop.f32.mrb[7].mxu1 }
  0xf5   :  { %v2683_v40 = vpop.f32.mrb[8].mxu1 }
  0xf6   :  { %v2685_v41 = vpop.f32.mrb[9].mxu1 }
  0xf7   :  { %v2687_v42 = vpop.f32.mrb[10].mxu1 }
  0xf8   :  { %v2689_v45 = vpop.f32.mrb[11].mxu1 }
  0xfd   :  { %v2691_v53 = vpop.f32.mrb[12].mxu1 }
  0xfe   :  { %v2693_v54 = vpop.f32.mrb[13].mxu1 }
  0xff   :  { %v2697_v58 = vpop.f32.mrb[14].mxu1 }
 0x100   :  { %v2699_v59 = vpop.f32.mrb[15].mxu1 }
 0x139   :  { %v1944_v63 = vpop.f32.mrb[0].mxu0 }
 0x13a   :  { %v559_v0 = vpop.f32.mrb[1].mxu0  ;;  %v820_v2 = vadd.f32 %v1944_v63, %v2708_v62 }
 0x13b   :  { %v1945_v1 = vpop.f32.mrb[2].mxu0  ;;  %v818_v7 = vadd.f32 %v2708_v62, %v559_v0 }
 0x13c   :  { %v821_v3 = vadd.f32 %v1945_v1, %v2708_v62  ;;  %v562_v5 = vpop.f32.mrb[3].mxu0 }
 0x13d   :  { %v819_v8 = vadd.f32 %v2708_v62, %v562_v5 }
 0x13e   :  { %v883_v9 = vpack.c.bf16 %v821_v3, %v820_v2 }
 0x13f   :  { %v882_v12 = vpack.c.bf16 %v819_v8, %v818_v7 }
 0x140   :  { %v915_v18 = vmax.bf16 %v2246_v14, %v883_v9 }
 0x141   :  { %v1948_v13 = vpop.f32.mrb[4].mxu0  ;;  %v914_v17 = vmax.bf16 %v2246_v14, %v882_v12 }
 0x142   :  { %v575_v19 = vpop.f32.mrb[5].mxu0  ;;  %v824_v23 = vadd.f32 %v1948_v13, %v2708_v62 }
 0x143   :  { %v1949_v22 = vpop.f32.mrb[6].mxu0  ;;  %2022 = vmatprep.mubr.bf16.mxu1 %v914_v17  ;;  %v822_v28 = vadd.f32 %v2708_v62, %v575_v19 }
 0x144   :  { %v825_v24 = vadd.f32 %v1949_v22, %v2708_v62  ;;  %v578_v27 = vpop.f32.mrb[7].mxu0  ;;  %2023 = vmatmul.mubr.bf16.vlgmr.msra.gmra.mrb[16].mxu1 %v915_v18 }
 0x145   :  { %v823_v29 = vadd.f32 %v2708_v62, %v578_v27  ;;  %2087 = vmatpush3.bf16.msra.mxu1 %v2214_v11 }
 0x146   :  { %v885_v31 = vpack.c.bf16 %v825_v24, %v824_v23  ;;  %2088 = vmatprep.subr.bf16.mxu1 %v2215_v20 }
 0x147   :  { %v884_v34 = vpack.c.bf16 %v823_v29, %v822_v28 }
 0x148   :  { %v917_v38 = vmax.bf16 %v2246_v14, %v885_v31 }
 0x149   :  { %v1952_v35 = vpop.f32.mrb[8].mxu0  ;;  %v916_v36 = vmax.bf16 %v2246_v14, %v884_v34  ;;  %2089 = vmatpush3.bf16.msra.mxu1 %v2215_v20 }
 0x14a   :  { %v591_v37 = vpop.f32.mrb[9].mxu0  ;;  %2090 = vmatprep.subr.bf16.mxu1 %v2216_v32  ;;  %v828_v44 = vadd.f32 %v1952_v35, %v2708_v62 }
 0x14b   :  { %v1953_v43 = vpop.f32.mrb[10].mxu0  ;;  %2026 = vmatprep.mubr.bf16.mxu1 %v916_v36  ;;  %v826_v48 = vadd.f32 %v2708_v62, %v591_v37 }
 0x14c   :  { %v829_v46 = vadd.f32 %v1953_v43, %v2708_v62  ;;  %v594_v47 = vpop.f32.mrb[11].mxu0  ;;  %2027 = vmatmul.mubr.bf16.gmra.mrb[20].mxu1 %v917_v38 }
 0x14d   :  { %v827_v49 = vadd.f32 %v2708_v62, %v594_v47  ;;  %2091 = vmatpush3.bf16.msra.mxu1 %v2216_v32 }
 0x14e   :  { %v887_v51 = vpack.c.bf16 %v829_v46, %v828_v44  ;;  %2092 = vmatprep.subr.bf16.mxu1 %v2217_v39 }
 0x14f   :  { %v886_v52 = vpack.c.bf16 %v827_v49, %v826_v48 }
 0x150   :  { %v919_v6 = vmax.bf16 %v2246_v14, %v887_v51 }
 0x151   :  { %v1956_v56 = vpop.f32.mrb[12].mxu0  ;;  %v918_v57 = vmax.bf16 %v2246_v14, %v886_v52  ;;  %2093 = vmatpush3.bf16.msra.mxu1 %v2217_v39 }
 0x152   :  { %v607_v4 = vpop.f32.mrb[13].mxu0  ;;  %v832_v60 = vadd.f32 %v1956_v56, %v2708_v62 }
 0x153   :  { %v1957_v50 = vpop.f32.mrb[14].mxu0  ;;  %2030 = vmatprep.mubr.bf16.mxu1 %v918_v57  ;;  %v830_v1 = vadd.f32 %v2708_v62, %v607_v4 }
 0x154   :  { %v833_v63 = vadd.f32 %v1957_v50, %v2708_v62  ;;  %v610_v0 = vpop.f32.mrb[15].mxu0  ;;  %2031 = vmatmul.mubr.bf16.gmra.mrb[24].mxu1 %v919_v6 }
 0x155   :  { %v831_v2 = vadd.f32 %v2708_v62, %v610_v0 }
 0x156   :  { %v889_v3 = vpack.c.bf16 %v833_v63, %v832_v60 }
 0x157   :  { %v888_v5 = vpack.c.bf16 %v831_v2, %v830_v1 }
 0x158   :  { %v921_v11 = vmax.bf16 %v2246_v14, %v889_v3 }
 0x159   :  { %v1960_v7 = vpop.f32.mrb[16].mxu0  ;;  %v920_v8 = vmax.bf16 %v2246_v14, %v888_v5 }
 0x15a   :  { %v623_v9 = vpop.f32.mrb[17].mxu0  ;;  %v836_v13 = vadd.f32 %v1960_v7, %v2708_v62 }
 0x15b   :  { %v1961_v12 = vpop.f32.mrb[18].mxu0  ;;  %2034 = vmatprep.mubr.bf16.mxu1 %v920_v8  ;;  %v834_v19 = vadd.f32 %v2708_v62, %v623_v9 }
 0x15c   :  { %v837_v17 = vadd.f32 %v1961_v12, %v2708_v62  ;;  %v626_v18 = vpop.f32.mrb[19].mxu0  ;;  %2035 = vmatmul.mubr.bf16.gmra.mrb[28].mxu1 %v921_v11 }
 0x15d   :  { %v835_v20 = vadd.f32 %v2708_v62, %v626_v18 }
 0x15e   :  { %v891_v22 = vpack.c.bf16 %v837_v17, %v836_v13 }
 0x15f   :  { %v890_v23 = vpack.c.bf16 %v835_v20, %v834_v19 }
 0x160   :  { %v923_v29 = vmax.bf16 %v2246_v14, %v891_v22 }
 0x161   :  { %v1964_v24 = vpop.f32.mrb[20].mxu0  ;;  %v922_v27 = vmax.bf16 %v2246_v14, %v890_v23 }
 0x162   :  { %v639_v28 = vpop.f32.mrb[21].mxu0  ;;  %v840_v32 = vadd.f32 %v1964_v24, %v2708_v62 }
 0x163   :  { %v1965_v31 = vpop.f32.mrb[22].mxu0  ;;  %2038 = vmatprep.mubr.bf16.mxu1 %v922_v27  ;;  %v838_v36 = vadd.f32 %v2708_v62, %v639_v28 }
 0x164   :  { %v841_v34 = vadd.f32 %v1965_v31, %v2708_v62  ;;  %v642_v35 = vpop.f32.mrb[23].mxu0  ;;  %2039 = vmatmul.mubr.bf16.gmra.mrb[32].mxu1 %v923_v29 }
 0x165   :  { %v839_v37 = vadd.f32 %v2708_v62, %v642_v35 }
 0x166   :  { %v893_v38 = vpack.c.bf16 %v841_v34, %v840_v32 }
 0x167   :  { %v892_v39 = vpack.c.bf16 %v839_v37, %v838_v36 }
 0x168   :  { %v925_v47 = vmax.bf16 %v2246_v14, %v893_v38 }
 0x169   :  { %v1968_v43 = vpop.f32.mrb[24].mxu0  ;;  %v924_v44 = vmax.bf16 %v2246_v14, %v892_v39 }
 0x16a   :  { %v655_v46 = vpop.f32.mrb[25].mxu0  ;;  %v844_v49 = vadd.f32 %v1968_v43, %v2708_v62 }
 0x16b   :  { %v1969_v48 = vpop.f32.mrb[26].mxu0  ;;  %2042 = vmatprep.mubr.bf16.mxu1 %v924_v44  ;;  %v842_v56 = vadd.f32 %v2708_v62, %v655_v46 }
 0x16c   :  { %v845_v51 = vadd.f32 %v1969_v48, %v2708_v62  ;;  %v658_v52 = vpop.f32.mrb[27].mxu0  ;;  %2043 = vmatmul.mubr.bf16.gmra.mrb[36].mxu1 %v925_v47 }
 0x16d   :  { %v843_v57 = vadd.f32 %v2708_v62, %v658_v52 }
 0x16e   :  { %v895_v4 = vpack.c.bf16 %v845_v51, %v844_v49 }
 0x16f   :  { %v894_v6 = vpack.c.bf16 %v843_v57, %v842_v56 }
 0x170   :  { %v927_v0 = vmax.bf16 %v2246_v14, %v895_v4 }
 0x171   :  { %v1972_v50 = vpop.f32.mrb[28].mxu0  ;;  %v926_v60 = vmax.bf16 %v2246_v14, %v894_v6 }
 0x172   :  { %v671_v63 = vpop.f32.mrb[29].mxu0  ;;  %v848_v2 = vadd.f32 %v1972_v50, %v2708_v62 }
 0x173   :  { %v1973_v1 = vpop.f32.mrb[30].mxu0  ;;  %2046 = vmatprep.mubr.bf16.mxu1 %v926_v60  ;;  %v846_v7 = vadd.f32 %v2708_v62, %v671_v63 }
 0x174   :  { %v849_v3 = vadd.f32 %v1973_v1, %v2708_v62  ;;  %v674_v5 = vpop.f32.mrb[31].mxu0  ;;  %2047 = vmatmul.mubr.bf16.gmra.mrb[40].mxu1 %v927_v0 }
 0x175   :  { %v847_v8 = vadd.f32 %v2708_v62, %v674_v5 }
 0x176   :  { %v897_v9 = vpack.c.bf16 %v849_v3, %v848_v2 }
 0x177   :  { %v896_v11 = vpack.c.bf16 %v847_v8, %v846_v7 }
 0x178   :  { %v929_v18 = vmax.bf16 %v2246_v14, %v897_v9 }
 0x179   :  { %v1976_v12 = vpop.f32.mrb[32].mxu0  ;;  %v928_v13 = vmax.bf16 %v2246_v14, %v896_v11 }
 0x17a   :  { %v687_v17 = vpop.f32.mrb[33].mxu0  ;;  %v852_v20 = vadd.f32 %v1976_v12, %v2708_v62 }
 0x17b   :  { %v1977_v19 = vpop.f32.mrb[34].mxu0  ;;  %2050 = vmatprep.mubr.bf16.mxu1 %v928_v13  ;;  %v850_v24 = vadd.f32 %v2708_v62, %v687_v17 }
 0x17c   :  { %v853_v22 = vadd.f32 %v1977_v19, %v2708_v62  ;;  %v690_v23 = vpop.f32.mrb[35].mxu0  ;;  %2051 = vmatmul.mubr.bf16.gmra.mrb[44].mxu1 %v929_v18 }
 0x17d   :  { %v851_v27 = vadd.f32 %v2708_v62, %v690_v23 }
 0x17e   :  { %v899_v28 = vpack.c.bf16 %v853_v22, %v852_v20 }
 0x17f   :  { %v898_v29 = vpack.c.bf16 %v851_v27, %v850_v24 }
 0x180   :  { %v931_v35 = vmax.bf16 %v2246_v14, %v899_v28 }
 0x181   :  { %v1980_v31 = vpop.f32.mrb[36].mxu0  ;;  %v930_v32 = vmax.bf16 %v2246_v14, %v898_v29 }
 0x182   :  { %v703_v34 = vpop.f32.mrb[37].mxu0  ;;  %v856_v37 = vadd.f32 %v1980_v31, %v2708_v62 }
 0x183   :  { %v1981_v36 = vpop.f32.mrb[38].mxu0  ;;  %2054 = vmatprep.mubr.bf16.mxu1 %v930_v32  ;;  %v854_v43 = vadd.f32 %v2708_v62, %v703_v34 }
 0x184   :  { %v857_v38 = vadd.f32 %v1981_v36, %v2708_v62  ;;  %v706_v39 = vpop.f32.mrb[39].mxu0  ;;  %2055 = vmatmul.mubr.bf16.gmra.mrb[48].mxu1 %v931_v35 }
 0x185   :  { %v855_v44 = vadd.f32 %v2708_v62, %v706_v39 }
 0x186   :  { %v901_v46 = vpack.c.bf16 %v857_v38, %v856_v37 }
 0x187   :  { %v900_v47 = vpack.c.bf16 %v855_v44, %v854_v43 }
 0x188   :  { %v933_v52 = vmax.bf16 %v2246_v14, %v901_v46 }
 0x189   :  { %v1984_v48 = vpop.f32.mrb[40].mxu0  ;;  %v932_v49 = vmax.bf16 %v2246_v14, %v900_v47 }
 0x18a   :  { %v719_v51 = vpop.f32.mrb[41].mxu0  ;;  %v860_v57 = vadd.f32 %v1984_v48, %v2708_v62 }
 0x18b   :  { %v1985_v56 = vpop.f32.mrb[42].mxu0  ;;  %2058 = vmatprep.mubr.bf16.mxu1 %v932_v49  ;;  %v858_v50 = vadd.f32 %v2708_v62, %v719_v51 }
 0x18c   :  { %v861_v4 = vadd.f32 %v1985_v56, %v2708_v62  ;;  %v722_v6 = vpop.f32.mrb[43].mxu0  ;;  %2059 = vmatmul.mubr.bf16.gmra.mrb[52].mxu1 %v933_v52  ;;  %v2218_v56 = vld [vmem:[%s3142_s4 + $0x20] sm:$0xff]  }
 0x18d   :  { %v859_v60 = vadd.f32 %v2708_v62, %v722_v6  ;;  %2094 = vmatprep.subr.bf16.mxu1 %v2218_v56 }
 0x18e   :  { %v903_v63 = vpack.c.bf16 %v861_v4, %v860_v57  ;;  %2095 = vmatpush3.bf16.msra.mxu1 %v2218_v56 }
 0x18f   :  { %v902_v0 = vpack.c.bf16 %v859_v60, %v858_v50 }
 0x190   :  { %v935_v5 = vmax.bf16 %v2246_v14, %v903_v63 }
 0x191   :  { %v1988_v1 = vpop.f32.mrb[44].mxu0  ;;  %v934_v2 = vmax.bf16 %v2246_v14, %v902_v0 }
 0x192   :  { %v735_v3 = vpop.f32.mrb[45].mxu0  ;;  %v864_v8 = vadd.f32 %v1988_v1, %v2708_v62 }
 0x193   :  { %v1989_v7 = vpop.f32.mrb[46].mxu0  ;;  %2062 = vmatprep.mubr.bf16.mxu1 %v934_v2  ;;  %v862_v12 = vadd.f32 %v2708_v62, %v735_v3 }
 0x194   :  { %v865_v9 = vadd.f32 %v1989_v7, %v2708_v62  ;;  %v738_v11 = vpop.f32.mrb[47].mxu0  ;;  %2063 = vmatmul.mubr.bf16.gmra.mrb[56].mxu1 %v935_v5 }
 0x195   :  { %v863_v13 = vadd.f32 %v2708_v62, %v738_v11 }
 0x196   :  { %v905_v17 = vpack.c.bf16 %v865_v9, %v864_v8 }
 0x197   :  { %v904_v18 = vpack.c.bf16 %v863_v13, %v862_v12 }
 0x198   :  { %v937_v24 = vmax.bf16 %v2246_v14, %v905_v17 }
 0x199   :  { %v1992_v19 = vpop.f32.mrb[48].mxu0  ;;  %v936_v20 = vmax.bf16 %v2246_v14, %v904_v18 }
 0x19a   :  { %v760_v22 = vadd.f32 %v1992_v19, %v2667_v10  ;;  %v751_v23 = vpop.f32.mrb[49].mxu0 }
 0x19b   :  { %v752_v27 = vadd.f32 %v751_v23, %v2669_v15  ;;  %v1993_v28 = vpop.f32.mrb[50].mxu0  ;;  %2066 = vmatprep.mubr.bf16.mxu1 %v936_v20 }
 0x19c   :  { %v763_v29 = vadd.f32 %v1993_v28, %v2671_v16  ;;  %v754_v31 = vpop.f32.mrb[51].mxu0  ;;  %2067 = vmatmul.mubr.bf16.gmra.mrb[60].mxu1 %v937_v24  ;;  %v868_v34 = vadd.f32 %v2708_v62, %v760_v22 }
 0x19d   :  { %v755_v32 = vadd.f32 %v754_v31, %v2673_v21  ;;  %v866_v36 = vadd.f32 %v2708_v62, %v752_v27  ;;  %v2219_v27 = vld [vmem:[%s3142_s4 + $0x28] sm:$0xff]   ;;  %v2220_v31 = vld [vmem:[%s3142_s4 + $0x30] sm:$0xff]  }
 0x19e   :  { %v869_v35 = vadd.f32 %v2708_v62, %v763_v29  ;;  %2096 = vmatprep.subr.bf16.mxu1 %v2219_v27 }
 0x19f   :  { %v867_v10 = vadd.f32 %v2708_v62, %v755_v32  ;;  %2097 = vmatpush3.bf16.msra.mxu1 %v2219_v27  ;;  %v964_v32 = vsub.s32 1, %v2695_v55 }
 0x1a0   :  { %v907_v37 = vpack.c.bf16 %v869_v35, %v868_v34  ;;  %2098 = vmatprep.subr.bf16.mxu1 %v2220_v31 }
 0x1a1   :  { %v906_v38 = vpack.c.bf16 %v867_v10, %v866_v36  ;;  %v1996_v39 = vpop.f32.mrb[52].mxu0  ;;  %v2848_v34 = vrot.slane %v2705_v61, %v964_v32 }
 0x1a2   :  { %v776_v15 = vadd.f32 %v1996_v39, %v2675_v25  ;;  %v767_v43 = vpop.f32.mrb[53].mxu0  ;;  %v939_v48 = vmax.bf16 %v2246_v14, %v907_v37 }
 0x1a3   :  { %v768_v16 = vadd.f32 %v767_v43, %v2677_v26  ;;  %v1997_v44 = vpop.f32.mrb[54].mxu0  ;;  %v938_v46 = vmax.bf16 %v2246_v14, %v906_v38  ;;  %2099 = vmatpush3.bf16.msra.mxu1 %v2220_v31 }
 0x1a4   :  { %v779_v21 = vadd.f32 %v1997_v44, %v2679_v30  ;;  %v770_v47 = vpop.f32.mrb[55].mxu0  ;;  %v872_v51 = vadd.f32 %v2708_v62, %v776_v15 }
 0x1a5   :  { %v771_v49 = vadd.f32 %v770_v47, %v2681_v33  ;;  %2070 = vmatprep.mubr.bf16.mxu1 %v938_v46  ;;  %v870_v25 = vadd.f32 %v2708_v62, %v768_v16 }
 0x1a6   :  { %v873_v52 = vadd.f32 %v2708_v62, %v779_v21  ;;  %2071 = vmatmul.mubr.bf16.gmra.mrb[64].mxu1 %v939_v48 }
 0x1a7   :  { %v871_v26 = vadd.f32 %v2708_v62, %v771_v49 }
 0x1a8   :  { %v909_v30 = vpack.c.bf16 %v873_v52, %v872_v51 }
 0x1a9   :  { %v908_v57 = vpack.c.bf16 %v871_v26, %v870_v25  ;;  %v2000_v4 = vpop.f32.mrb[56].mxu0 }
 0x1aa   :  { %v792_v33 = vadd.f32 %v2000_v4, %v2683_v40  ;;  %v783_v6 = vpop.f32.mrb[57].mxu0  ;;  %v941_v2 = vmax.bf16 %v2246_v14, %v909_v30 }
 0x1ab   :  { %v784_v50 = vadd.f32 %v783_v6, %v2685_v41  ;;  %v2001_v60 = vpop.f32.mrb[58].mxu0  ;;  %v940_v63 = vmax.bf16 %v2246_v14, %v908_v57 }
 0x1ac   :  { %v795_v0 = vadd.f32 %v2001_v60, %v2687_v42  ;;  %v786_v1 = vpop.f32.mrb[59].mxu0  ;;  %v876_v5 = vadd.f32 %v2708_v62, %v792_v33 }
 0x1ad   :  { %v787_v3 = vadd.f32 %v786_v1, %v2689_v45  ;;  %2074 = vmatprep.mubr.bf16.mxu1 %v940_v63  ;;  %v874_v40 = vadd.f32 %v2708_v62, %v784_v50 }
 0x1ae   :  { %v877_v7 = vadd.f32 %v2708_v62, %v795_v0  ;;  %2075 = vmatmul.mubr.bf16.gmra.mrb[68].mxu1 %v941_v2 }
 0x1af   :  { %v875_v41 = vadd.f32 %v2708_v62, %v787_v3 }
 0x1b0   :  { %v911_v8 = vpack.c.bf16 %v877_v7, %v876_v5 }
 0x1b1   :  { %v910_v9 = vpack.c.bf16 %v875_v41, %v874_v40  ;;  %v2004_v11 = vpop.f32.mrb[60].mxu0 }
 0x1b2   :  { %v808_v42 = vadd.f32 %v2004_v11, %v2691_v53  ;;  %v799_v12 = vpop.f32.mrb[61].mxu0  ;;  %v943_v20 = vmax.bf16 %v2246_v14, %v911_v8 }
 0x1b3   :  { %v800_v13 = vadd.f32 %v799_v12, %v2693_v54  ;;  %v2005_v17 = vpop.f32.mrb[62].mxu0  ;;  %v942_v45 = vmax.bf16 %v2246_v14, %v910_v9 }
 0x1b4   :  { %v811_v18 = vadd.f32 %v2005_v17, %v2697_v58  ;;  %v802_v19 = vpop.f32.mrb[63].mxu0  ;;  %v880_v23 = vadd.f32 %v2708_v62, %v808_v42 }
 0x1b5   :  { %v803_v22 = vadd.f32 %v802_v19, %v2699_v59  ;;  %2078 = vmatprep.mubr.bf16.mxu1 %v942_v45  ;;  %v878_v53 = vadd.f32 %v2708_v62, %v800_v13 }
 0x1b6   :  { %v881_v24 = vadd.f32 %v2708_v62, %v811_v18  ;;  %2079 = vmatmul.mubr.bf16.gmra.mrb[72].mxu1 %v943_v20 }
 0x1b7   :  { %v879_v54 = vadd.f32 %v2708_v62, %v803_v22  ;;  %v2221_v62 = vld [vmem:[%s3142_s4 + $0x38] sm:$0xff]   ;;  %s2247_s4 = smov [#allocation2]  }
 0x1b8   :  { %v913_v58 = vpack.c.bf16 %v881_v24, %v880_v23  ;;  %2100 = vmatprep.subr.bf16.mxu1 %v2221_v62  ;;  %s1649_s7 = sshll.u32 %s2247_s4, 4  ;;  %s1650_s7 = int_to_ptr.vmem [resolvable:$true] %s1649_s7 }
 0x1b9   :  { %v912_v28 = vpack.c.bf16 %v879_v54, %v878_v53  ;;  %2101 = vmatpush3.bf16.msra.mxu1 %v2221_v62  ;;  %s2222_s0 = scalar_lea.vmem %s1650_s7, 4096  ;;  %p2227_p1 = scmp.lt.s32.totalorder %s1650_s7, %s1650_s7 }
 0x1ba   :  { %v945_v29 = vmax.bf16 %v2246_v14, %v913_v58  ;;  %p2223_p0 = scmp.ne.s32.totalorder %s1650_s7, %s2222_s0  ;;  %p2228_p2 = scmp.lt.s32.totalorder %s2222_s0, %s2222_s0 }
 0x1bb   :  { %v944_v59 = vmax.bf16 %v2246_v14, %v912_v28 }
 0x1bc   :  { %p2229_p3 = por %p2228_p2, %p2227_p1 }
 0x1bd   :  { %2082 = vmatprep.mubr.bf16.mxu1 %v944_v59 }
 0x1be   :  { %2083 = vmatmul.mubr.bf16.gmra.mrb[76].mxu1 %v945_v29  ;;  %p2230_p4 = pnand %p2229_p3, %p2223_p0 }
 0x217   :  { %v2024_v35 = vpop.f32.mrb[16].mxu1 }
 0x218   :  { %v1048_v36 = vpop.f32.mrb[17].mxu1  ;;  %v2851_v37 = vadd.f32 %v2024_v35, %v2848_v34 }
 0x219   :  { %v2025_v10 = vpop.f32.mrb[18].mxu1  ;;  %v2857_v15 = vadd.f32 %v1048_v36, %v2848_v34 }
 0x21a   :  { %v2854_v38 = vadd.f32 %v2025_v10, %v2848_v34  ;;  %v1051_v39 = vpop.f32.mrb[19].mxu1 }
 0x21b   :  { %v2860_v43 = vadd.f32 %v1051_v39, %v2848_v34 }
 0x21c   :  { %v1304_v16 = vpack.c.bf16 %v2854_v38, %v2851_v37 }
 0x21d   :  { %v1303_v44 = vpack.c.bf16 %v2860_v43, %v2857_v15 }
 0x21f   :  { %v2028_v46 = vpop.f32.mrb[20].mxu1 }
 0x220   :  { %v1064_v21 = vpop.f32.mrb[21].mxu1  ;;  %v2867_v48 = vadd.f32 %v2028_v46, %v2848_v34 }
 0x221   :  { %v2029_v47 = vpop.f32.mrb[22].mxu1  ;;  %v2873_v52 = vadd.f32 %v1064_v21, %v2848_v34 }
 0x222   :  { %v2870_v49 = vadd.f32 %v2029_v47, %v2848_v34  ;;  %v1067_v51 = vpop.f32.mrb[23].mxu1 }
 0x223   :  { %v2876_v25 = vadd.f32 %v1067_v51, %v2848_v34 }
 0x224   :  { %v1306_v26 = vpack.c.bf16 %v2870_v49, %v2867_v48 }
 0x225   :  { %v1305_v56 = vpack.c.bf16 %v2876_v25, %v2873_v52 }
 0x227   :  { %v2032_v30 = vpop.f32.mrb[24].mxu1 }
 0x228   :  { %v1080_v57 = vpop.f32.mrb[25].mxu1  ;;  %v2883_v33 = vadd.f32 %v2032_v30, %v2848_v34 }
 0x229   :  { %v2033_v4 = vpop.f32.mrb[26].mxu1  ;;  %v2889_v60 = vadd.f32 %v1080_v57, %v2848_v34 }
 0x22a   :  { %v2886_v6 = vadd.f32 %v2033_v4, %v2848_v34  ;;  %v1083_v50 = vpop.f32.mrb[27].mxu1 }
 0x22b   :  { %v2892_v63 = vadd.f32 %v1083_v50, %v2848_v34 }
 0x22c   :  { %v1308_v0 = vpack.c.bf16 %v2886_v6, %v2883_v33 }
 0x22d   :  { %v1307_v1 = vpack.c.bf16 %v2892_v63, %v2889_v60 }
 0x22f   :  { %v2036_v2 = vpop.f32.mrb[28].mxu1 }
 0x230   :  { %v1096_v3 = vpop.f32.mrb[29].mxu1  ;;  %v2899_v7 = vadd.f32 %v2036_v2, %v2848_v34 }
 0x231   :  { %v2037_v5 = vpop.f32.mrb[30].mxu1  ;;  %v2905_v8 = vadd.f32 %v1096_v3, %v2848_v34 }
 0x232   :  { %v2902_v40 = vadd.f32 %v2037_v5, %v2848_v34  ;;  %v1099_v41 = vpop.f32.mrb[31].mxu1 }
 0x233   :  { %v2908_v9 = vadd.f32 %v1099_v41, %v2848_v34 }
 0x234   :  { %v1310_v11 = vpack.c.bf16 %v2902_v40, %v2899_v7 }
 0x235   :  { %v1309_v42 = vpack.c.bf16 %v2908_v9, %v2905_v8 }
 0x237   :  { %v2040_v12 = vpop.f32.mrb[32].mxu1 }
 0x238   :  { %v1112_v13 = vpop.f32.mrb[33].mxu1  ;;  %v2915_v45 = vadd.f32 %v2040_v12, %v2848_v34 }
 0x239   :  { %v2041_v17 = vpop.f32.mrb[34].mxu1  ;;  %v2921_v20 = vadd.f32 %v1112_v13, %v2848_v34 }
 0x23a   :  { %v2918_v18 = vadd.f32 %v2041_v17, %v2848_v34  ;;  %v1115_v19 = vpop.f32.mrb[35].mxu1 }
 0x23b   :  { %v2924_v22 = vadd.f32 %v1115_v19, %v2848_v34 }
 0x23c   :  { %v1312_v23 = vpack.c.bf16 %v2918_v18, %v2915_v45 }
 0x23d   :  { %v1311_v24 = vpack.c.bf16 %v2924_v22, %v2921_v20 }
 0x23f   :  { %v2044_v53 = vpop.f32.mrb[36].mxu1 }
 0x240   :  { %v1128_v54 = vpop.f32.mrb[37].mxu1  ;;  %v2931_v58 = vadd.f32 %v2044_v53, %v2848_v34 }
 0x241   :  { %v2045_v27 = vpop.f32.mrb[38].mxu1  ;;  %v2937_v29 = vadd.f32 %v1128_v54, %v2848_v34 }
 0x242   :  { %v2934_v28 = vadd.f32 %v2045_v27, %v2848_v34  ;;  %v1131_v59 = vpop.f32.mrb[39].mxu1 }
 0x243   :  { %v2940_v31 = vadd.f32 %v1131_v59, %v2848_v34 }
 0x244   :  { %v1314_v62 = vpack.c.bf16 %v2934_v28, %v2931_v58 }
 0x245   :  { %v1313_v32 = vpack.c.bf16 %v2940_v31, %v2937_v29 }
 0x247   :  { %v2048_v35 = vpop.f32.mrb[40].mxu1 }
 0x248   :  { %v1144_v36 = vpop.f32.mrb[41].mxu1  ;;  %v2947_v39 = vadd.f32 %v2048_v35, %v2848_v34 }
 0x249   :  { %v2049_v10 = vpop.f32.mrb[42].mxu1  ;;  %v2953_v47 = vadd.f32 %v1144_v36, %v2848_v34 }
 0x24a   :  { %v2950_v46 = vadd.f32 %v2049_v10, %v2848_v34  ;;  %v1147_v21 = vpop.f32.mrb[43].mxu1 }
 0x24b   :  { %v2956_v51 = vadd.f32 %v1147_v21, %v2848_v34 }
 0x24c   :  { %v1316_v30 = vpack.c.bf16 %v2950_v46, %v2947_v39 }
 0x24d   :  { %v1315_v57 = vpack.c.bf16 %v2956_v51, %v2953_v47 }
 0x24f   :  { %v2052_v4 = vpop.f32.mrb[44].mxu1 }
 0x250   :  { %v1160_v50 = vpop.f32.mrb[45].mxu1  ;;  %v2963_v3 = vadd.f32 %v2052_v4, %v2848_v34 }
 0x251   :  { %v2053_v2 = vpop.f32.mrb[46].mxu1  ;;  %v2969_v12 = vadd.f32 %v1160_v50, %v2848_v34 }
 0x252   :  { %v2966_v5 = vadd.f32 %v2053_v2, %v2848_v34  ;;  %v1163_v41 = vpop.f32.mrb[47].mxu1  ;;  %v1336_v2 = vmax.bf16 %v2246_v14, %v1304_v16 }
 0x253   :  { %v2972_v13 = vadd.f32 %v1163_v41, %v2848_v34 }
 0x257   :  { %v2056_v53 = vpop.f32.mrb[48].mxu1 }
 0x258   :  { %v1176_v54 = vpop.f32.mrb[49].mxu1  ;;  %v1185_v59 = vadd.f32 %v2056_v53, %v2848_v34  ;;  %v1335_v53 = vmax.bf16 %v2246_v14, %v1303_v44  ;;  %v1338_v44 = vmax.bf16 %v2246_v14, %v1306_v26 }
 0x259   :  { %v2057_v27 = vpop.f32.mrb[50].mxu1  ;;  %v1177_v10 = vadd.f32 %v1176_v54, %v2848_v34 }
 0x25a   :  { %v1188_v35 = vadd.f32 %v2057_v27, %v2848_v34  ;;  %v1179_v36 = vpop.f32.mrb[51].mxu1 }
 0x25b   :  { %v1180_v21 = vadd.f32 %v1179_v36, %v2848_v34 }
 0x25c   :  { %v1320_v4 = vpack.c.bf16 %v1188_v35, %v1185_v59 }
 0x25d   :  { %v1319_v50 = vpack.c.bf16 %v1180_v21, %v1177_v10 }
 0x25e   :  { %v1352_v41 = vmax.bf16 %v2246_v14, %v1320_v4 }
 0x25f   :  { %v1351_v27 = vmax.bf16 %v2246_v14, %v1319_v50  ;;  %v2060_v19 = vpop.f32.mrb[52].mxu1 }
 0x260   :  { %v1368_v54 = vadd.bf16 %v1352_v41, %v1336_v2  ;;  %v1192_v17 = vpop.f32.mrb[53].mxu1  ;;  %v1201_v35 = vadd.f32 %v2060_v19, %v2848_v34  ;;  %v1337_v19 = vmax.bf16 %v2246_v14, %v1305_v56  ;;  %v1340_v56 = vmax.bf16 %v2246_v14, %v1308_v0 }
 0x261   :  { %v2061_v36 = vpop.f32.mrb[54].mxu1  ;;  %v1367_v59 = vadd.bf16 %v1351_v27, %v1335_v53  ;;  %v1193_v16 = vadd.f32 %v1192_v17, %v2848_v34 }
 0x262   :  { %v1204_v37 = vadd.f32 %v2061_v36, %v2848_v34  ;;  %v1195_v38 = vpop.f32.mrb[55].mxu1 }
 0x263   :  { %v1196_v10 = vadd.f32 %v1195_v38, %v2848_v34  ;;  %2102 = vmatprep.mubr.bf16.mxu1 %v1367_v59  ;;  %v1339_v59 = vmax.bf16 %v2246_v14, %v1307_v1  ;;  %v1342_v1 = vmax.bf16 %v2246_v14, %v1310_v11 }
 0x264   :  { %v1322_v15 = vpack.c.bf16 %v1204_v37, %v1201_v35  ;;  %2103 = vmatmul.mubr.bf16.vlgmr.msra.gmra.mrb[80].mxu1 %v1368_v54 }
 0x265   :  { %v1321_v43 = vpack.c.bf16 %v1196_v10, %v1193_v16 }
 0x266   :  { %v1354_v21 = vmax.bf16 %v2246_v14, %v1322_v15 }
 0x267   :  { %v1353_v17 = vmax.bf16 %v2246_v14, %v1321_v43  ;;  %v2064_v4 = vpop.f32.mrb[56].mxu1 }
 0x268   :  { %v1208_v50 = vpop.f32.mrb[57].mxu1  ;;  %v1370_v2 = vadd.bf16 %v1354_v21, %v1338_v44  ;;  %v1217_v27 = vadd.f32 %v2064_v4, %v2848_v34 }
 0x269   :  { %v2065_v41 = vpop.f32.mrb[58].mxu1  ;;  %v1369_v53 = vadd.bf16 %v1353_v17, %v1337_v19  ;;  %v1209_v26 = vadd.f32 %v1208_v50, %v2848_v34  ;;  %v1341_v19 = vmax.bf16 %v2246_v14, %v1309_v42 }
 0x26a   :  { %v1220_v48 = vadd.f32 %v2065_v41, %v2848_v34  ;;  %v1211_v49 = vpop.f32.mrb[59].mxu1 }
 0x26b   :  { %v1212_v54 = vadd.f32 %v1211_v49, %v2848_v34  ;;  %2106 = vmatprep.mubr.bf16.mxu1 %v1369_v53 }
 0x26c   :  { %v1324_v52 = vpack.c.bf16 %v1220_v48, %v1217_v27  ;;  %2107 = vmatmul.mubr.bf16.gmra.mrb[84].mxu1 %v1370_v2  ;;  %v1344_v48 = vmax.bf16 %v2246_v14, %v1312_v23 }
 0x26d   :  { %v1323_v25 = vpack.c.bf16 %v1212_v54, %v1209_v26  ;;  %v1343_v26 = vmax.bf16 %v2246_v14, %v1311_v24  ;;  %v1346_v24 = vmax.bf16 %v2246_v14, %v1314_v62 }
 0x26e   :  { %v1356_v36 = vmax.bf16 %v2246_v14, %v1324_v52 }
 0x26f   :  { %v1355_v35 = vmax.bf16 %v2246_v14, %v1323_v25  ;;  %v2068_v37 = vpop.f32.mrb[60].mxu1 }
 0x270   :  { %v1224_v38 = vpop.f32.mrb[61].mxu1  ;;  %v1372_v16 = vadd.bf16 %v1356_v36, %v1340_v56  ;;  %v1233_v43 = vadd.f32 %v2068_v37, %v2848_v34 }
 0x271   :  { %v2069_v10 = vpop.f32.mrb[62].mxu1  ;;  %v1371_v15 = vadd.bf16 %v1355_v35, %v1339_v59  ;;  %v1225_v0 = vadd.f32 %v1224_v38, %v2848_v34 }
 0x272   :  { %v1236_v33 = vadd.f32 %v2069_v10, %v2848_v34  ;;  %v1227_v6 = vpop.f32.mrb[63].mxu1 }
 0x273   :  { %v1228_v44 = vadd.f32 %v1227_v6, %v2848_v34  ;;  %2110 = vmatprep.mubr.bf16.mxu1 %v1371_v15 }
 0x274   :  { %v1326_v60 = vpack.c.bf16 %v1236_v33, %v1233_v43  ;;  %2111 = vmatmul.mubr.bf16.gmra.mrb[88].mxu1 %v1372_v16  ;;  %v1345_v16 = vmax.bf16 %v2246_v14, %v1313_v32  ;;  %v1348_v32 = vmax.bf16 %v2246_v14, %v1316_v30 }
 0x275   :  { %v1325_v63 = vpack.c.bf16 %v1228_v44, %v1225_v0 }
 0x276   :  { %v1358_v21 = vmax.bf16 %v2246_v14, %v1326_v60 }
 0x277   :  { %v1357_v17 = vmax.bf16 %v2246_v14, %v1325_v63 }
 0x278   :  { %v1374_v4 = vadd.bf16 %v1358_v21, %v1342_v1  ;;  %v1347_v1 = vmax.bf16 %v2246_v14, %v1315_v57  ;;  %v3145_v57 = vpack.c.bf16 %v2966_v5, %v2963_v3 }
 0x279   :  { %v2072_v50 = vpop.f32.mrb[64].mxu1  ;;  %v1373_v2 = vadd.bf16 %v1357_v17, %v1341_v19 }
 0x27a   :  { %v1240_v41 = vpop.f32.mrb[65].mxu1  ;;  %v1249_v27 = vadd.f32 %v2072_v50, %v2848_v34 }
 0x27b   :  { %v2073_v53 = vpop.f32.mrb[66].mxu1  ;;  %2114 = vmatprep.mubr.bf16.mxu1 %v1373_v2  ;;  %v1241_v11 = vadd.f32 %v1240_v41, %v2848_v34 }
 0x27c   :  { %v1252_v7 = vadd.f32 %v2073_v53, %v2848_v34  ;;  %v1243_v40 = vpop.f32.mrb[67].mxu1  ;;  %2115 = vmatmul.mubr.bf16.gmra.mrb[92].mxu1 %v1374_v4 }
 0x27d   :  { %v1244_v8 = vadd.f32 %v1243_v40, %v2848_v34  ;;  %v3146_v40 = vpack.c.bf16 %v2972_v13, %v2969_v12 }
 0x27e   :  { %v1328_v9 = vpack.c.bf16 %v1252_v7, %v1249_v27  ;;  %v1350_v27 = vmax.bf16 %v2246_v14, %v3145_v57 }
 0x27f   :  { %v1327_v42 = vpack.c.bf16 %v1244_v8, %v1241_v11  ;;  %v1349_v11 = vmax.bf16 %v2246_v14, %v3146_v40 }
 0x280   :  { %v1360_v49 = vmax.bf16 %v2246_v14, %v1328_v9 }
 0x281   :  { %v1359_v54 = vmax.bf16 %v2246_v14, %v1327_v42  ;;  %v2076_v52 = vpop.f32.mrb[68].mxu1  ;;  %v1401_v42 = vsub.s32 2, %v2695_v55 }
 0x282   :  { %v1256_v25 = vpop.f32.mrb[69].mxu1  ;;  %v1376_v56 = vadd.bf16 %v1360_v49, %v1344_v48  ;;  %v1265_v35 = vadd.f32 %v2076_v52, %v2848_v34 }
 0x283   :  { %v2077_v36 = vpop.f32.mrb[70].mxu1  ;;  %v1375_v59 = vadd.bf16 %v1359_v54, %v1343_v26  ;;  %v1257_v23 = vadd.f32 %v1256_v25, %v2848_v34  ;;  %v3092_v48 = vrot.slane %v2705_v61, %v1401_v42 }
 0x284   :  { %v1268_v45 = vadd.f32 %v2077_v36, %v2848_v34  ;;  %v1259_v18 = vpop.f32.mrb[71].mxu1 }
 0x285   :  { %v1260_v37 = vadd.f32 %v1259_v18, %v2848_v34  ;;  %2118 = vmatprep.mubr.bf16.mxu1 %v1375_v59 }
 0x286   :  { %v1330_v20 = vpack.c.bf16 %v1268_v45, %v1265_v35  ;;  %2119 = vmatmul.mubr.bf16.gmra.mrb[96].mxu1 %v1376_v56 }
 0x287   :  { %v1329_v22 = vpack.c.bf16 %v1260_v37, %v1257_v23 }
 0x288   :  { %v1362_v38 = vmax.bf16 %v2246_v14, %v1330_v20 }
 0x289   :  { %v1361_v10 = vmax.bf16 %v2246_v14, %v1329_v22  ;;  %v2080_v15 = vpop.f32.mrb[72].mxu1 }
 0x28a   :  { %v1272_v43 = vpop.f32.mrb[73].mxu1  ;;  %v1378_v33 = vadd.bf16 %v1362_v38, %v1346_v24  ;;  %v1281_v44 = vadd.f32 %v2080_v15, %v2848_v34 }
 0x28b   :  { %v2081_v6 = vpop.f32.mrb[74].mxu1  ;;  %v1377_v0 = vadd.bf16 %v1361_v10, %v1345_v16  ;;  %v1273_v62 = vadd.f32 %v1272_v43, %v2848_v34 }
 0x28c   :  { %v1284_v58 = vadd.f32 %v2081_v6, %v2848_v34  ;;  %v1275_v28 = vpop.f32.mrb[75].mxu1 }
 0x28d   :  { %v1276_v60 = vadd.f32 %v1275_v28, %v2848_v34  ;;  %2122 = vmatprep.mubr.bf16.mxu1 %v1377_v0 }
 0x28e   :  { %v1332_v29 = vpack.c.bf16 %v1284_v58, %v1281_v44  ;;  %2123 = vmatmul.mubr.bf16.gmra.mrb[100].mxu1 %v1378_v33 }
 0x28f   :  { %v1331_v31 = vpack.c.bf16 %v1276_v60, %v1273_v62 }
 0x290   :  { %v1364_v63 = vmax.bf16 %v2246_v14, %v1332_v29 }
 0x291   :  { %v1363_v21 = vmax.bf16 %v2246_v14, %v1331_v31  ;;  %v2084_v19 = vpop.f32.mrb[76].mxu1 }
 0x292   :  { %v1288_v17 = vpop.f32.mrb[77].mxu1  ;;  %v1380_v4 = vadd.bf16 %v1364_v63, %v1348_v32  ;;  %v1297_v41 = vadd.f32 %v2084_v19, %v2848_v34 }
 0x293   :  { %v2085_v50 = vpop.f32.mrb[78].mxu1  ;;  %v1379_v2 = vadd.bf16 %v1363_v21, %v1347_v1  ;;  %v1289_v30 = vadd.f32 %v1288_v17, %v2848_v34 }
 0x294   :  { %v1300_v39 = vadd.f32 %v2085_v50, %v2848_v34  ;;  %v1291_v46 = vpop.f32.mrb[79].mxu1 }
 0x295   :  { %v1292_v53 = vadd.f32 %v1291_v46, %v2848_v34  ;;  %2126 = vmatprep.mubr.bf16.mxu1 %v1379_v2 }
 0x296   :  { %v1334_v47 = vpack.c.bf16 %v1300_v39, %v1297_v41  ;;  %2127 = vmatmul.mubr.bf16.gmra.mrb[104].mxu1 %v1380_v4 }
 0x297   :  { %v1333_v51 = vpack.c.bf16 %v1292_v53, %v1289_v30 }
 0x298   :  { %v1366_v7 = vmax.bf16 %v2246_v14, %v1334_v47 }
 0x299   :  { %v1365_v8 = vmax.bf16 %v2246_v14, %v1333_v51 }
 0x29a   :  { %v1382_v9 = vadd.bf16 %v1366_v7, %v1350_v27 }
 0x29b   :  { %v1381_v34 = vadd.bf16 %v1365_v8, %v1349_v11 }
 0x29d   :  { %2130 = vmatprep.mubr.bf16.mxu1 %v1381_v34 }
 0x29e   :  { %2131 = vmatmul.mubr.bf16.gmra.mrb[108].mxu1 %v1382_v9 }
 0x337   :  { %v2104_v3 = vpop.f32.mrb[80].mxu1 }
 0x338   :  { %v1494_v5 = vadd.f32 %v2104_v3, %v3092_v48  ;;  %v1485_v49 = vpop.f32.mrb[81].mxu1 }
 0x339   :  { %v1486_v26 = vadd.f32 %v1485_v49, %v3092_v48  ;;  %v2105_v12 = vpop.f32.mrb[82].mxu1 }
 0x33a   :  { %1614 = vst [vmem:[#allocation2 + $0x10] sm:$0xff] %v1494_v5  ;;  %v1497_v13 = vadd.f32 %v2105_v12, %v3092_v48  ;;  %v1488_v14 = vpop.f32.mrb[83].mxu1 }
 0x33b   :  { %1612 = vst [vmem:[#allocation2] sm:$0xff] %v1486_v26  ;;  %v1489_v54 = vadd.f32 %v1488_v14, %v3092_v48 }
 0x33c   :  { %1615 = vst [vmem:[#allocation2 + $0x18] sm:$0xff] %v1497_v13 }
 0x33d   :  { %1613 = vst [vmem:[#allocation2 + $0x8] sm:$0xff] %v1489_v54 }
 0x33f   :  { %v2108_v55 = vpop.f32.mrb[84].mxu1 }
 0x340   :  { %v1510_v61 = vadd.f32 %v2108_v55, %v3092_v48  ;;  %v1501_v52 = vpop.f32.mrb[85].mxu1 }
 0x341   :  { %v1502_v25 = vadd.f32 %v1501_v52, %v3092_v48  ;;  %v2109_v56 = vpop.f32.mrb[86].mxu1 }
 0x342   :  { %1618 = vst [vmem:[#allocation2 + $0x30] sm:$0xff] %v1510_v61  ;;  %v1513_v36 = vadd.f32 %v2109_v56, %v3092_v48  ;;  %v1504_v59 = vpop.f32.mrb[87].mxu1 }
 0x343   :  { %1616 = vst [vmem:[#allocation2 + $0x20] sm:$0xff] %v1502_v25  ;;  %v1505_v35 = vadd.f32 %v1504_v59, %v3092_v48 }
 0x344   :  { %1619 = vst [vmem:[#allocation2 + $0x38] sm:$0xff] %v1513_v36 }
 0x345   :  { %1617 = vst [vmem:[#allocation2 + $0x28] sm:$0xff] %v1505_v35 }
 0x347   :  { %v2112_v45 = vpop.f32.mrb[88].mxu1 }
 0x348   :  { %v1526_v18 = vadd.f32 %v2112_v45, %v3092_v48  ;;  %v1517_v23 = vpop.f32.mrb[89].mxu1 }
 0x349   :  { %v1518_v37 = vadd.f32 %v1517_v23, %v3092_v48  ;;  %v2113_v20 = vpop.f32.mrb[90].mxu1 }
 0x34a   :  { %1622 = vst [vmem:[#allocation2 + $0x50] sm:$0xff] %v1526_v18  ;;  %v1529_v22 = vadd.f32 %v2113_v20, %v3092_v48  ;;  %v1520_v24 = vpop.f32.mrb[91].mxu1 }
 0x34b   :  { %1620 = vst [vmem:[#allocation2 + $0x40] sm:$0xff] %v1518_v37  ;;  %v1521_v38 = vadd.f32 %v1520_v24, %v3092_v48 }
 0x34c   :  { %1623 = vst [vmem:[#allocation2 + $0x58] sm:$0xff] %v1529_v22 }
 0x34d   :  { %1621 = vst [vmem:[#allocation2 + $0x48] sm:$0xff] %v1521_v38 }
 0x34f   :  { %v2116_v16 = vpop.f32.mrb[92].mxu1 }
 0x350   :  { %v1542_v10 = vadd.f32 %v2116_v16, %v3092_v48  ;;  %v1533_v15 = vpop.f32.mrb[93].mxu1 }
 0x351   :  { %v1534_v43 = vadd.f32 %v1533_v15, %v3092_v48  ;;  %v2117_v33 = vpop.f32.mrb[94].mxu1 }
 0x352   :  { %1626 = vst [vmem:[#allocation2 + $0x70] sm:$0xff] %v1542_v10  ;;  %v1545_v6 = vadd.f32 %v2117_v33, %v3092_v48  ;;  %v1536_v0 = vpop.f32.mrb[95].mxu1 }
 0x353   :  { %1624 = vst [vmem:[#allocation2 + $0x60] sm:$0xff] %v1534_v43  ;;  %v1537_v44 = vadd.f32 %v1536_v0, %v3092_v48 }
 0x354   :  { %1627 = vst [vmem:[#allocation2 + $0x78] sm:$0xff] %v1545_v6 }
 0x355   :  { %1625 = vst [vmem:[#allocation2 + $0x68] sm:$0xff] %v1537_v44 }
 0x359   :  { %v2120_v58 = vpop.f32.mrb[96].mxu1 }
 0x35a   :  { %v1558_v28 = vadd.f32 %v2120_v58, %v3092_v48  ;;  %v1549_v62 = vpop.f32.mrb[97].mxu1 }
 0x35b   :  { %v1550_v60 = vadd.f32 %v1549_v62, %v3092_v48  ;;  %v2121_v29 = vpop.f32.mrb[98].mxu1 }
 0x35c   :  { %1630 = vst [vmem:[#allocation2 + $0x90] sm:$0xff] %v1558_v28  ;;  %v1561_v31 = vadd.f32 %v2121_v29, %v3092_v48  ;;  %v1552_v32 = vpop.f32.mrb[99].mxu1 }
 0x35d   :  { %1628 = vst [vmem:[#allocation2 + $0x80] sm:$0xff] %v1550_v60  ;;  %v1553_v63 = vadd.f32 %v1552_v32, %v3092_v48 }
 0x35e   :  { %1631 = vst [vmem:[#allocation2 + $0x98] sm:$0xff] %v1561_v31 }
 0x35f   :  { %1629 = vst [vmem:[#allocation2 + $0x88] sm:$0xff] %v1553_v63 }
 0x361   :  { %v2124_v1 = vpop.f32.mrb[100].mxu1 }
 0x362   :  { %v1574_v21 = vadd.f32 %v2124_v1, %v3092_v48  ;;  %v1565_v19 = vpop.f32.mrb[101].mxu1 }
 0x363   :  { %v1566_v17 = vadd.f32 %v1565_v19, %v3092_v48  ;;  %v2125_v4 = vpop.f32.mrb[102].mxu1 }
 0x364   :  { %1634 = vst [vmem:[#allocation2 + $0xb0] sm:$0xff] %v1574_v21  ;;  %v1577_v50 = vadd.f32 %v2125_v4, %v3092_v48  ;;  %v1568_v2 = vpop.f32.mrb[103].mxu1 }
 0x365   :  { %1632 = vst [vmem:[#allocation2 + $0xa0] sm:$0xff] %v1566_v17  ;;  %v1569_v41 = vadd.f32 %v1568_v2, %v3092_v48 }
 0x366   :  { %1635 = vst [vmem:[#allocation2 + $0xb8] sm:$0xff] %v1577_v50 }
 0x367   :  { %1633 = vst [vmem:[#allocation2 + $0xa8] sm:$0xff] %v1569_v41 }
 0x369   :  { %v2128_v39 = vpop.f32.mrb[104].mxu1 }
 0x36a   :  { %v1590_v46 = vadd.f32 %v2128_v39, %v3092_v48  ;;  %v1581_v30 = vpop.f32.mrb[105].mxu1 }
 0x36b   :  { %v1582_v53 = vadd.f32 %v1581_v30, %v3092_v48  ;;  %v2129_v47 = vpop.f32.mrb[106].mxu1 }
 0x36c   :  { %1638 = vst [vmem:[#allocation2 + $0xd0] sm:$0xff] %v1590_v46  ;;  %v1593_v51 = vadd.f32 %v2129_v47, %v3092_v48  ;;  %v1584_v57 = vpop.f32.mrb[107].mxu1 }
 0x36d   :  { %1636 = vst [vmem:[#allocation2 + $0xc0] sm:$0xff] %v1582_v53  ;;  %v1585_v27 = vadd.f32 %v1584_v57, %v3092_v48 }
 0x36e   :  { %1639 = vst [vmem:[#allocation2 + $0xd8] sm:$0xff] %v1593_v51 }
 0x36f   :  { %1637 = vst [vmem:[#allocation2 + $0xc8] sm:$0xff] %v1585_v27 }
 0x371   :  { %v2132_v7 = vpop.f32.mrb[108].mxu1 }
 0x372   :  { %v1606_v40 = vadd.f32 %v2132_v7, %v3092_v48  ;;  %v1597_v11 = vpop.f32.mrb[109].mxu1 }
 0x373   :  { %v1598_v8 = vadd.f32 %v1597_v11, %v3092_v48  ;;  %v2133_v9 = vpop.f32.mrb[110].mxu1 }
 0x374   :  { %1642 = vst [vmem:[#allocation2 + $0xf0] sm:$0xff] %v1606_v40  ;;  %v1609_v34 = vadd.f32 %v2133_v9, %v3092_v48  ;;  %v1600_v42 = vpop.f32.mrb[111].mxu1 }
 0x375   :  { %1640 = vst [vmem:[#allocation2 + $0xe0] sm:$0xff] %v1598_v8  ;;  %v1601_v3 = vadd.f32 %v1600_v42, %v3092_v48 }
 0x376   :  { %1643 = vst [vmem:[#allocation2 + $0xf8] sm:$0xff] %v1609_v34 }
 0x377   :  { %1641 = vst [vmem:[#allocation2 + $0xe8] sm:$0xff] %v1601_v3 }
 0x378   :  { %2233 = shalt.err (!%p2230_p4)
}
 0x379   :  { %s2234_s10 = scalar_lea.hbm %s3144_s6, 4096 }
 0x37a   :  { %p2235_p5 = scmp.ne.s32.totalorder %s3144_s6, %s2234_s10  ;;  %p2238_p6 = scmp.lt.u32.totalorder %s2234_s10, %s3144_s6 }
 0x37c   :  { %p2240_p7 = pnand %p2238_p6, %p2235_p5 }
 0x37e   :  { %2243 = shalt.err (!%p2240_p7)
}
 0x37f   :  { %s2248_s14 = smov 128   ;;  %s2249_s15 = smov 8  }
 0x380   :  { %1655 = dma.vmem_to_hbm [thread:$0]  %s1650_s7, 4096, %s3144_s6, [#allocation3], %s2248_s14, %s2248_s14, %s2249_s15  }
 0x381   :  { %2244 = dma.done.wait [#allocation3], 4096  }
 0x382   :  { %2245 = vsyncadd [#allocation3], 4294963200 }
 0x383   :  { %1659 = vsyncpa [#allocation3], 1 }

</bundles_post_ra>
